<compile_context>
chip_gen: v6e
topology: v6e:2x2x1
jax: 0.10.0
libtpu: 0.0.40
codegen_flags: <defaults>
</compile_context>

<pallas_src>
import math

import jax
import jax.numpy as jnp
from jax.experimental import pallas as pl
from jax.experimental.pallas import tpu as pltpu

NUM_FREQ = 10
IN_DIM = 3
OUT_DIM = 2 * NUM_FREQ * IN_DIM  # 60
TWO_PI = 2.0 * math.pi


def _pos_embed_kernel(xt_ref, ot_ref):
    # xt_ref: (3, TN) tile, N on the lane axis.  ot_ref: (60, TN) tile.
    x = xt_ref[...].astype(jnp.float32)          # compute in f32 even for bf16 inputs
    s1 = jnp.sin(TWO_PI * x)                     # (3, TN) -- only transcendentals
    c1 = jnp.cos(TWO_PI * x)                     # (3, TN)

    # f = 0: sin(0) = 0, cos(0) = 1 (no transcendental evaluation needed).
    ot_ref[0:3, :] = jnp.zeros_like(x).astype(ot_ref.dtype)
    ot_ref[30:33, :] = jnp.ones_like(x).astype(ot_ref.dtype)

    # f = 1 directly, f = 2..9 via the angle-addition recurrence (pure VALU mul/add).
    s_f, c_f = s1, c1
    ot_ref[3:6, :] = s_f.astype(ot_ref.dtype)
    ot_ref[33:36, :] = c_f.astype(ot_ref.dtype)
    for f in range(2, NUM_FREQ):
        s_f, c_f = s_f * c1 + c_f * s1, c_f * c1 - s_f * s1
        ot_ref[3 * f:3 * f + 3, :] = s_f.astype(ot_ref.dtype)
        ot_ref[30 + 3 * f:30 + 3 * f + 3, :] = c_f.astype(ot_ref.dtype)


def position_embed_t(x_t, *, tile_n=8192):
    """Lane-dense fast path: x_t (3, N) -> (60, N).  No padding / slicing copies.

    tile_n must be a multiple of 128 (lane granularity); per-tile VMEM is
    ~(8 + 64) * tile_n * 4 B * 2 buffers ~= 4.6 MiB at the default, comfortably
    inside every generation's default scoped-VMEM limit.
    """
    d, n = x_t.shape
    assert d == IN_DIM, f"expected leading dim {IN_DIM}, got {d}"

    if n <= tile_n:
        tn = n               # single block == full lane extent (any N allowed)
    else:
        tn = tile_n          # multiple of 128; last block is OOB-masked by Pallas
    grid = (pl.cdiv(n, tn),)
    # NOTE(v7x): with 2 TensorCores an even grid balances the "parallel" axis;
    # for very large N callers can pick tile_n so that cdiv(N, tile_n) is even.

    return pl.pallas_call(
        _pos_embed_kernel,
        out_shape=jax.ShapeDtypeStruct((OUT_DIM, n), x_t.dtype),
        grid_spec=pltpu.PrefetchScalarGridSpec(
            num_scalar_prefetch=0,
            grid=grid,
            in_specs=[pl.BlockSpec((IN_DIM, tn), lambda i: (0, i))],
            out_specs=pl.BlockSpec((OUT_DIM, tn), lambda i: (0, i)),
        ),
        compiler_params=pltpu.CompilerParams(
            dimension_semantics=("parallel",),
        ),
    )(x_t)


def position_embed(x, *, tile_n=8192):
    """PyTorch-compatible interface: x (N, 3) -> (N, 60).

    The two transposes are plain XLA copies outside the kernel; latency/bandwidth
    sensitive callers should consume the (60, N) layout from position_embed_t
    directly (or fuse the downstream Linear(60, W) into the kernel).
    """
    n, d = x.shape
    assert d == IN_DIM, f"expected last dim {IN_DIM}, got {d}"
    out_t = position_embed_t(jnp.transpose(x), tile_n=tile_n)   # (60, N)
    return jnp.transpose(out_t)                                 # (N, 60)


def position_embed_ref(x):
    """Pure-JAX reference mirroring the PyTorch forward exactly."""
    sin_blocks = [jnp.sin(2.0 * i * math.pi * x) for i in range(NUM_FREQ)]
    cos_blocks = [jnp.cos(2.0 * i * math.pi * x) for i in range(NUM_FREQ)]
    return jnp.concatenate(sin_blocks + cos_blocks, axis=1)


if __name__ == "__main__":
    key = jax.random.PRNGKey(0)

    # Tolerance: the angle-addition recurrence accumulates a few ulps of f32 error
    # by f=9 (worst case a few 1e-6 absolute) -- well below anything meaningful
    # for a Fourier-feature embedding.
    TOL = 3e-5

    for n in (50, 2000):
        key, k = jax.random.split(key)
        x = jax.random.uniform(k, (n, IN_DIM), dtype=jnp.float32)
        ref = position_embed_ref(x)

        # PyTorch-interface path.
        out = jax.block_until_ready(position_embed(x))
        assert out.shape == (n, OUT_DIM), out.shape
        err = float(jnp.max(jnp.abs(out - ref)))
        assert err < TOL, f"compat path max err {err}"

        # Lane-dense fast path (no wrapper transposes).
        out_t = jax.block_until_ready(position_embed_t(jnp.transpose(x)))
        assert out_t.shape == (OUT_DIM, n), out_t.shape
        err_t = float(jnp.max(jnp.abs(out_t - jnp.transpose(ref))))
        assert err_t < TOL, f"fast path max err {err_t}"

        # Multi-step grid with a ragged last lane block (exercises OOB masking).
        out_rag = jax.block_until_ready(position_embed_t(jnp.transpose(x), tile_n=256))
        err_rag = float(jnp.max(jnp.abs(out_rag - jnp.transpose(ref))))
        assert err_rag < TOL, f"ragged-grid max err {err_rag}"

    print("KERNEL_OK")
</pallas_src>

<mosaic_0001>
module attributes {stable_mosaic.version = 11 : i64} {
  func.func @_pos_embed_kernel(%arg0: i32, %arg1: memref<3x50xf32, #tpu.memory_space<vmem>>, %arg2: memref<60x50xf32, #tpu.memory_space<vmem>>) attributes {dimension_semantics = [#tpu.dimension_semantics<parallel>], iteration_bounds = array<i64: 1>, scalar_prefetch = 0 : i64, scratch_operands = 0 : i64, tpu.core_type = #tpu.core_type<tc>, window_params = [{transform_indices = @transform_0, window_bounds = array<i64: 3, 50>}, {transform_indices = @transform_1, window_bounds = array<i64: 60, 50>}]} {
    %c0 = arith.constant 0 : index
    %c0_0 = arith.constant 0 : index
    %0 = vector.load %arg1[%c0, %c0_0] : memref<3x50xf32, #tpu.memory_space<vmem>>, vector<3x50xf32>
    %cst = arith.constant 6.28318548 : f32
    %1 = vector.broadcast %cst : f32 to vector<3x50xf32>
    %2 = arith.mulf %1, %0 : vector<3x50xf32>
    %3 = math.sin %2 : vector<3x50xf32>
    %cst_1 = arith.constant 6.28318548 : f32
    %4 = vector.broadcast %cst_1 : f32 to vector<3x50xf32>
    %5 = arith.mulf %4, %0 : vector<3x50xf32>
    %6 = math.cos %5 : vector<3x50xf32>
    %cst_2 = arith.constant 0.000000e+00 : f32
    %7 = vector.broadcast %cst_2 : f32 to vector<3x50xf32>
    %c0_3 = arith.constant 0 : index
    %c0_4 = arith.constant 0 : index
    %8 = vector.load %arg2[%c0_3, %c0_4] : memref<60x50xf32, #tpu.memory_space<vmem>>, vector<3x50xf32>
    tpu.vector_store %arg2[%c0_3, %c0_4], %7 {strides = array<i32>} : memref<60x50xf32, #tpu.memory_space<vmem>>, vector<3x50xf32>,
    %cst_5 = arith.constant 1.000000e+00 : f32
    %9 = vector.broadcast %cst_5 : f32 to vector<3x50xf32>
    %c30 = arith.constant 30 : index
    %c0_6 = arith.constant 0 : index
    %10 = vector.load %arg2[%c30, %c0_6] : memref<60x50xf32, #tpu.memory_space<vmem>>, vector<3x50xf32>
    tpu.vector_store %arg2[%c30, %c0_6], %9 {strides = array<i32>} : memref<60x50xf32, #tpu.memory_space<vmem>>, vector<3x50xf32>,
    %c3 = arith.constant 3 : index
    %c0_7 = arith.constant 0 : index
    %11 = vector.load %arg2[%c3, %c0_7] : memref<60x50xf32, #tpu.memory_space<vmem>>, vector<3x50xf32>
    tpu.vector_store %arg2[%c3, %c0_7], %3 {strides = array<i32>} : memref<60x50xf32, #tpu.memory_space<vmem>>, vector<3x50xf32>,
    %c33 = arith.constant 33 : index
    %c0_8 = arith.constant 0 : index
    %12 = vector.load %arg2[%c33, %c0_8] : memref<60x50xf32, #tpu.memory_space<vmem>>, vector<3x50xf32>
    tpu.vector_store %arg2[%c33, %c0_8], %6 {strides = array<i32>} : memref<60x50xf32, #tpu.memory_space<vmem>>, vector<3x50xf32>,
    %13 = arith.mulf %3, %6 : vector<3x50xf32>
    %14 = arith.mulf %6, %3 : vector<3x50xf32>
    %15 = arith.addf %13, %14 : vector<3x50xf32>
    %16 = arith.mulf %6, %6 : vector<3x50xf32>
    %17 = arith.mulf %3, %3 : vector<3x50xf32>
    %18 = arith.subf %16, %17 : vector<3x50xf32>
    %c6 = arith.constant 6 : index
    %c0_9 = arith.constant 0 : index
    %19 = vector.load %arg2[%c6, %c0_9] : memref<60x50xf32, #tpu.memory_space<vmem>>, vector<3x50xf32>
    tpu.vector_store %arg2[%c6, %c0_9], %15 {strides = array<i32>} : memref<60x50xf32, #tpu.memory_space<vmem>>, vector<3x50xf32>,
    %c36 = arith.constant 36 : index
    %c0_10 = arith.constant 0 : index
    %20 = vector.load %arg2[%c36, %c0_10] : memref<60x50xf32, #tpu.memory_space<vmem>>, vector<3x50xf32>
    tpu.vector_store %arg2[%c36, %c0_10], %18 {strides = array<i32>} : memref<60x50xf32, #tpu.memory_space<vmem>>, vector<3x50xf32>,
    %21 = arith.mulf %15, %6 : vector<3x50xf32>
    %22 = arith.mulf %18, %3 : vector<3x50xf32>
    %23 = arith.addf %21, %22 : vector<3x50xf32>
    %24 = arith.mulf %18, %6 : vector<3x50xf32>
    %25 = arith.mulf %15, %3 : vector<3x50xf32>
    %26 = arith.subf %24, %25 : vector<3x50xf32>
    %c9 = arith.constant 9 : index
    %c0_11 = arith.constant 0 : index
    %27 = vector.load %arg2[%c9, %c0_11] : memref<60x50xf32, #tpu.memory_space<vmem>>, vector<3x50xf32>
    tpu.vector_store %arg2[%c9, %c0_11], %23 {strides = array<i32>} : memref<60x50xf32, #tpu.memory_space<vmem>>, vector<3x50xf32>,
    %c39 = arith.constant 39 : index
    %c0_12 = arith.constant 0 : index
    %28 = vector.load %arg2[%c39, %c0_12] : memref<60x50xf32, #tpu.memory_space<vmem>>, vector<3x50xf32>
    tpu.vector_store %arg2[%c39, %c0_12], %26 {strides = array<i32>} : memref<60x50xf32, #tpu.memory_space<vmem>>, vector<3x50xf32>,
    %29 = arith.mulf %23, %6 : vector<3x50xf32>
    %30 = arith.mulf %26, %3 : vector<3x50xf32>
    %31 = arith.addf %29, %30 : vector<3x50xf32>
    %32 = arith.mulf %26, %6 : vector<3x50xf32>
    %33 = arith.mulf %23, %3 : vector<3x50xf32>
    %34 = arith.subf %32, %33 : vector<3x50xf32>
    %c12 = arith.constant 12 : index
    %c0_13 = arith.constant 0 : index
    %35 = vector.load %arg2[%c12, %c0_13] : memref<60x50xf32, #tpu.memory_space<vmem>>, vector<3x50xf32>
    tpu.vector_store %arg2[%c12, %c0_13], %31 {strides = array<i32>} : memref<60x50xf32, #tpu.memory_space<vmem>>, vector<3x50xf32>,
    %c42 = arith.constant 42 : index
    %c0_14 = arith.constant 0 : index
    %36 = vector.load %arg2[%c42, %c0_14] : memref<60x50xf32, #tpu.memory_space<vmem>>, vector<3x50xf32>
    tpu.vector_store %arg2[%c42, %c0_14], %34 {strides = array<i32>} : memref<60x50xf32, #tpu.memory_space<vmem>>, vector<3x50xf32>,
    %37 = arith.mulf %31, %6 : vector<3x50xf32>
    %38 = arith.mulf %34, %3 : vector<3x50xf32>
    %39 = arith.addf %37, %38 : vector<3x50xf32>
    %40 = arith.mulf %34, %6 : vector<3x50xf32>
    %41 = arith.mulf %31, %3 : vector<3x50xf32>
    %42 = arith.subf %40, %41 : vector<3x50xf32>
    %c15 = arith.constant 15 : index
    %c0_15 = arith.constant 0 : index
    %43 = vector.load %arg2[%c15, %c0_15] : memref<60x50xf32, #tpu.memory_space<vmem>>, vector<3x50xf32>
    tpu.vector_store %arg2[%c15, %c0_15], %39 {strides = array<i32>} : memref<60x50xf32, #tpu.memory_space<vmem>>, vector<3x50xf32>,
    %c45 = arith.constant 45 : index
    %c0_16 = arith.constant 0 : index
    %44 = vector.load %arg2[%c45, %c0_16] : memref<60x50xf32, #tpu.memory_space<vmem>>, vector<3x50xf32>
    tpu.vector_store %arg2[%c45, %c0_16], %42 {strides = array<i32>} : memref<60x50xf32, #tpu.memory_space<vmem>>, vector<3x50xf32>,
    %45 = arith.mulf %39, %6 : vector<3x50xf32>
    %46 = arith.mulf %42, %3 : vector<3x50xf32>
    %47 = arith.addf %45, %46 : vector<3x50xf32>
    %48 = arith.mulf %42, %6 : vector<3x50xf32>
    %49 = arith.mulf %39, %3 : vector<3x50xf32>
    %50 = arith.subf %48, %49 : vector<3x50xf32>
    %c18 = arith.constant 18 : index
    %c0_17 = arith.constant 0 : index
    %51 = vector.load %arg2[%c18, %c0_17] : memref<60x50xf32, #tpu.memory_space<vmem>>, vector<3x50xf32>
    tpu.vector_store %arg2[%c18, %c0_17], %47 {strides = array<i32>} : memref<60x50xf32, #tpu.memory_space<vmem>>, vector<3x50xf32>,
    %c48 = arith.constant 48 : index
    %c0_18 = arith.constant 0 : index
    %52 = vector.load %arg2[%c48, %c0_18] : memref<60x50xf32, #tpu.memory_space<vmem>>, vector<3x50xf32>
    tpu.vector_store %arg2[%c48, %c0_18], %50 {strides = array<i32>} : memref<60x50xf32, #tpu.memory_space<vmem>>, vector<3x50xf32>,
    %53 = arith.mulf %47, %6 : vector<3x50xf32>
    %54 = arith.mulf %50, %3 : vector<3x50xf32>
    %55 = arith.addf %53, %54 : vector<3x50xf32>
    %56 = arith.mulf %50, %6 : vector<3x50xf32>
    %57 = arith.mulf %47, %3 : vector<3x50xf32>
    %58 = arith.subf %56, %57 : vector<3x50xf32>
    %c21 = arith.constant 21 : index
    %c0_19 = arith.constant 0 : index
    %59 = vector.load %arg2[%c21, %c0_19] : memref<60x50xf32, #tpu.memory_space<vmem>>, vector<3x50xf32>
    tpu.vector_store %arg2[%c21, %c0_19], %55 {strides = array<i32>} : memref<60x50xf32, #tpu.memory_space<vmem>>, vector<3x50xf32>,
    %c51 = arith.constant 51 : index
    %c0_20 = arith.constant 0 : index
    %60 = vector.load %arg2[%c51, %c0_20] : memref<60x50xf32, #tpu.memory_space<vmem>>, vector<3x50xf32>
    tpu.vector_store %arg2[%c51, %c0_20], %58 {strides = array<i32>} : memref<60x50xf32, #tpu.memory_space<vmem>>, vector<3x50xf32>,
    %61 = arith.mulf %55, %6 : vector<3x50xf32>
    %62 = arith.mulf %58, %3 : vector<3x50xf32>
    %63 = arith.addf %61, %62 : vector<3x50xf32>
    %64 = arith.mulf %58, %6 : vector<3x50xf32>
    %65 = arith.mulf %55, %3 : vector<3x50xf32>
    %66 = arith.subf %64, %65 : vector<3x50xf32>
    %c24 = arith.constant 24 : index
    %c0_21 = arith.constant 0 : index
    %67 = vector.load %arg2[%c24, %c0_21] : memref<60x50xf32, #tpu.memory_space<vmem>>, vector<3x50xf32>
    tpu.vector_store %arg2[%c24, %c0_21], %63 {strides = array<i32>} : memref<60x50xf32, #tpu.memory_space<vmem>>, vector<3x50xf32>,
    %c54 = arith.constant 54 : index
    %c0_22 = arith.constant 0 : index
    %68 = vector.load %arg2[%c54, %c0_22] : memref<60x50xf32, #tpu.memory_space<vmem>>, vector<3x50xf32>
    tpu.vector_store %arg2[%c54, %c0_22], %66 {strides = array<i32>} : memref<60x50xf32, #tpu.memory_space<vmem>>, vector<3x50xf32>,
    %69 = arith.mulf %63, %6 : vector<3x50xf32>
    %70 = arith.mulf %66, %3 : vector<3x50xf32>
    %71 = arith.addf %69, %70 : vector<3x50xf32>
    %72 = arith.mulf %66, %6 : vector<3x50xf32>
    %73 = arith.mulf %63, %3 : vector<3x50xf32>
    %74 = arith.subf %72, %73 : vector<3x50xf32>
    %c27 = arith.constant 27 : index
    %c0_23 = arith.constant 0 : index
    %75 = vector.load %arg2[%c27, %c0_23] : memref<60x50xf32, #tpu.memory_space<vmem>>, vector<3x50xf32>
    tpu.vector_store %arg2[%c27, %c0_23], %71 {strides = array<i32>} : memref<60x50xf32, #tpu.memory_space<vmem>>, vector<3x50xf32>,
    %c57 = arith.constant 57 : index
    %c0_24 = arith.constant 0 : index
    %76 = vector.load %arg2[%c57, %c0_24] : memref<60x50xf32, #tpu.memory_space<vmem>>, vector<3x50xf32>
    tpu.vector_store %arg2[%c57, %c0_24], %74 {strides = array<i32>} : memref<60x50xf32, #tpu.memory_space<vmem>>, vector<3x50xf32>,
    return
  }
  func.func @transform_0(%arg0: i32) -> (i32, i32) {
    %c0_i32 = arith.constant 0 : i32
    %c0_i32_0 = arith.constant 0 : i32
    return %c0_i32, %arg0 : i32, i32
  }
  func.func @transform_1(%arg0: i32) -> (i32, i32) {
    %c0_i32 = arith.constant 0 : i32
    %c0_i32_0 = arith.constant 0 : i32
    return %c0_i32, %arg0 : i32, i32
  }
}

</mosaic_0001>

<bundles_post_ra>
// kernel: tpu_custom_call.1
= control target key start
LH: loop header
LB: loop body
LE: loop exit
PB: predicated region body
PF: predicated region fallthrough
CT: control target
= control target key end

     0   :  { %6 = vsyncpa [#allocation3], 0  ;;  %s349_s6 = smov [#allocation2]   ;;  %s472_s0 = inlined_call_operand.hbm [shape: f32[3,50], index: 0, kind: input, shape index: {}]   ;;  %s473_s1 = inlined_call_operand.vmem [shape: f32[60,50], index: 1, kind: output, shape index: {}]  }
   0x1   :  { %s13_s7 = sshll.u32 %s349_s6, 4  ;;  %s14_s7 = int_to_ptr.vmem [resolvable:$true] %s13_s7 }
   0x2   :  { %s335_s8 = scalar_lea.vmem %s14_s7, 64  ;;  %p340_p1 = scmp.lt.s32.totalorder %s14_s7, %s14_s7 }
   0x3   :  { %p336_p0 = scmp.ne.s32.totalorder %s14_s7, %s335_s8  ;;  %p341_p2 = scmp.lt.s32.totalorder %s335_s8, %s335_s8 }
   0x5   :  { %p342_p3 = por %p341_p2, %p340_p1 }
   0x7   :  { %p343_p4 = pnand %p342_p3, %p336_p0 }
   0x9   :  { %346 = shalt.err (!%p343_p4)
}
   0xa   :  { %16 = dma.hbm_to_vmem [thread:$0]  %s472_s0, 64, %s14_s7, [#allocation3]  }
   0xb   :  { %347 = dma.done.wait [#allocation3], 64  }
   0xc   :  { %348 = vsyncadd [#allocation3], 4294967232  ;;  %vm229_vm0 = vcmask 403456   ;;  %v350_v0 = vmov 0.0   ;;  %v351_v1 = vmov 1.0  }
   0xd   :  { %230 = vst.msk [vmem:[%s473_s1] sm:$0x7] %vm229_vm0, %v350_v0  ;;  %231 = vst.msk [vmem:[%s473_s1 + $0x1e] sm:$0x7] %vm229_vm0, %v351_v1  ;;  %v20_v2 = vld [vmem:[#allocation2] sm:$0x7] }
   0xe   :  { %v379_v3 = vmul.f32 6.2831855, %v20_v2  ;;  %v352_v15 = vmov 683565275   ;;  %v353_v17 = vmov 2475754826  }
   0xf   :  { %v354_v19 = vmov 2131351028   ;;  %v355_v21 = vmov 2102212464   ;;  %v356_v23 = vmov 920167782  }
  0x10   :  { %v25_v4 = vand.u32 2139095040, %v379_v3  ;;  %v22_v6 = vand.u32 2147483647, %v379_v3  ;;  %v357_v30 = vmov 1326507024   ;;  %vm24_vm8 = vcmp.lt.s32.totalorder %v379_v3, 0 }
  0x12   :  { %v26_v5 = vshrl.u32 %v25_v4, 23  ;;  %v29_v9 = vand.u32 8388607, %v22_v6  ;;  %vm23_vm9 = vcmp.le.f32.partialorder %v22_v6, 0.7853982 }
  0x14   :  { %v302_v7 = vadd.s32 4294967169, %v26_v5  ;;  %v30_v12 = vor.u32 8388608, %v29_v9 }
  0x16   :  { %v32_v8 = vadd.s32 1, %v302_v7  ;;  %v70_v32 = vshll.u32 %v30_v12, 8 }
  0x18   :  { %vm33_vm1 = vcmp.gt.s32.totalorder %v32_v8, 0 }
  0x19   :  { %v34_v10 = vsel %vm33_vm1, %v32_v8, 0  ;;  %vm114_vm1 = vweird.f32 %v379_v3 }
  0x1a   :  { %v36_v11 = vand.u32 31, %v34_v10  ;;  %v35_v13 = vshrl.u32 %v34_v10, 5 }
  0x1c   :  { %v37_v14 = vsub.s32 32, %v36_v11  ;;  %v39_v16 = vshll.u32 %v352_v15, %v36_v11  ;;  %v42_v18 = vshll.u32 %v353_v17, %v36_v11  ;;  %v45_v20 = vshll.u32 %v354_v19, %v36_v11 }
  0x1d   :  { %v48_v22 = vshll.u32 %v355_v21, %v36_v11  ;;  %v51_v24 = vshll.u32 %v356_v23, %v36_v11  ;;  %vm54_vm2 = vcmp.lt.s32.totalorder %v35_v13, 1  ;;  %vm57_vm3 = vcmp.lt.s32.totalorder %v35_v13, 4 }
  0x1e   :  { %v38_v25 = vshrl.u32 %v352_v15, %v37_v14  ;;  %v40_v26 = vshrl.u32 %v353_v17, %v37_v14  ;;  %v43_v27 = vshrl.u32 %v354_v19, %v37_v14  ;;  %v46_v28 = vshrl.u32 %v355_v21, %v37_v14 }
  0x1f   :  { %v49_v29 = vshrl.u32 %v356_v23, %v37_v14  ;;  %v52_v31 = vshrl.u32 %v357_v30, %v37_v14  ;;  %vm55_vm4 = vcmp.lt.s32.totalorder %v35_v13, 2  ;;  %vm56_vm5 = vcmp.lt.s32.totalorder %v35_v13, 3 }
  0x20   :  { %v41_v33 = vor.u32 %v40_v26, %v39_v16  ;;  %v44_v34 = vor.u32 %v43_v27, %v42_v18  ;;  %v47_v35 = vor.u32 %v46_v28, %v45_v20 }
  0x21   :  { %v50_v36 = vor.u32 %v49_v29, %v48_v22  ;;  %v53_v37 = vor.u32 %v52_v31, %v51_v24 }
  0x22   :  { %v58_v38 = vsel %vm54_vm2, %v38_v25, %v41_v33  ;;  %v59_v39 = vsel %vm57_vm3, %v47_v35, 2102212464  ;;  %v62_v40 = vsel %vm54_vm2, %v41_v33, %v44_v34  ;;  %v66_v41 = vsel %vm54_vm2, %v44_v34, %v47_v35 }
  0x23   :  { %v60_v42 = vsel %vm56_vm5, %v44_v34, %v59_v39  ;;  %v63_v43 = vsel %vm57_vm3, %v50_v36, 920167782  ;;  %v67_v44 = vsel %vm57_vm3, %v53_v37, 1326507024 }
  0x24   :  { %v64_v45 = vsel %vm56_vm5, %v47_v35, %v63_v43  ;;  %v68_v46 = vsel %vm56_vm5, %v50_v36, %v67_v44  ;;  %v61_v47 = vsel %vm55_vm4, %v58_v38, %v60_v42 }
  0x25   :  { %v65_v48 = vsel %vm55_vm4, %v62_v40, %v64_v45  ;;  %v69_v49 = vsel %vm55_vm4, %v66_v41, %v68_v46  ;;  %v77_v54 = vmul.u32 %v70_v32, %v61_v47 }
  0x26   :  { %v385_v50 = vmul.u32.u64.low %v70_v32, %v69_v49  ;;  %v386_v51 = vmul.u32.u64.high %v70_v32, %v69_v49, %v385_v50  ;;  %v388_v52 = vmul.u32.u64.low %v70_v32, %v65_v48  ;;  %v389_v53 = vmul.u32.u64.high %v70_v32, %v65_v48, %v388_v52 }
  0x28   :  { %vm79_vm6 = vc.u32 %v386_v51, %v388_v52  ;;  %v80_v55 = vadd.s32 1, %v389_v53  ;;  %v78_v2 = vadd.s32 %v388_v52, %v386_v51 }
  0x2a   :  { %v81_v56 = vsel %vm79_vm6, %v80_v55, %v389_v53 }
  0x2b   :  { %v82_v57 = vadd.s32 %v81_v56, %v77_v54 }
  0x2d   :  { %v83_v58 = vadd.s32 536870912, %v82_v57 }
  0x2f   :  { %v84_v59 = vshrl.u32 %v83_v58, 30 }
  0x31   :  { %v85_v60 = vshll.u32 %v84_v59, 30  ;;  %v108_v17 = vsub.s32 4, %v84_v59 }
  0x33   :  { %v86_v61 = vsub.s32 %v82_v57, %v85_v60  ;;  %v109_v20 = vsel %vm24_vm8, %v108_v17, %v84_v59 }
  0x34   :  { %v111_v22 = vsel %vm23_vm9, 0, %v109_v20 }
  0x35   :  { %v88_v62 = vsub.s32 0, %v86_v61  ;;  %v115_v23 = vadd.s32 3, %v111_v22  ;;  %v219_v25 = vand.u32 3, %v111_v22 }
  0x37   :  { %v303_v63 = vmin.u32 %v88_v62, %v86_v61  ;;  %v116_v24 = vand.u32 3, %v115_v23  ;;  %vm224_vm11 = vcmp.eq.s32.totalorder %v219_v25, 2  ;;  %vm221_vm13 = vcmp.eq.s32.totalorder %v219_v25, 0 }
  0x38   :  { %vm220_vm15 = vcmp.lt.s32.totalorder %v219_v25, 2 }
  0x39   :  { %v90_v0 = vclz %v303_v63  ;;  %vm121_vm10 = vcmp.eq.s32.totalorder %v116_v24, 2  ;;  %vm118_vm12 = vcmp.eq.s32.totalorder %v116_v24, 0  ;;  %vm117_vm14 = vcmp.lt.s32.totalorder %v116_v24, 2 }
  0x3b   :  { %v304_v1 = vadd.s32 4294967294, %v90_v0 }
  0x3d   :  { %vm305_vm7 = vcmp.lt.s32.totalorder %v304_v1, 0 }
  0x3e   :  { %v93_v4 = vsel %vm305_vm7, 0, %v304_v1 }
  0x3f   :  { %v94_v5 = vsub.s32 32, %v93_v4  ;;  %v95_v7 = vshll.u32 %v86_v61, %v93_v4  ;;  %v98_v8 = vsub.s32 4294967266, %v93_v4 }
  0x41   :  { %v96_v9 = vshrl.u32 %v78_v2, %v94_v5  ;;  %v99_v10 = vadd.s32 127, %v98_v8 }
  0x43   :  { %v97_v11 = vor.u32 %v96_v9, %v95_v7  ;;  %v100_v12 = vshll.u32 %v99_v10, 23 }
  0x45   :  { %v101_v13 = vor.u32 4788187, %v100_v12  ;;  %v104_v14 = vcvt.s32.f32 %v97_v11 }
  0x47   :  { %v102_v15 = vand.u32 2147483647, %v101_v13 }
  0x49   :  { %v105_v16 = vmul.f32 %v104_v14, %v102_v15 }
  0x4b   :  { %v106_v18 = vxor.u32 2147483648, %v105_v16 }
  0x4d   :  { %v107_v19 = vsel %vm24_vm8, %v106_v18, %v105_v16 }
  0x4e   :  { %v110_v21 = vsel %vm23_vm9, %v379_v3, %v107_v19 }
  0x4f   :  { %323 = vcosq.f32 %v110_v21 }
  0x50   :  { %325 = vsinq.f32 %v110_v21 }
  0x5c   :  { %v324_v26 = vpop.eup %323 }
  0x5d   :  { %v326_v27 = vpop.eup %325  ;;  %v122_v28 = vxor.u32 2147483648, %v324_v26 }
  0x5e   :  { %v119_v6 = vxor.u32 2147483648, %v326_v27 }
  0x5f   :  { %v123_v29 = vsel %vm121_vm10, %v122_v28, %v326_v27  ;;  %v226_v30 = vsel %vm224_vm11, %v122_v28, %v326_v27 }
  0x60   :  { %v120_v31 = vsel %vm118_vm12, %v324_v26, %v119_v6  ;;  %v223_v32 = vsel %vm221_vm13, %v324_v26, %v119_v6 }
  0x61   :  { %v124_v33 = vsel %vm117_vm14, %v120_v31, %v123_v29  ;;  %v227_v34 = vsel %vm220_vm15, %v223_v32, %v226_v30 }
  0x62   :  { %v125_v35 = vsel %vm114_vm1, nan, %v124_v33  ;;  %v228_v36 = vsel %vm114_vm1, nan, %v227_v34 }
  0x63   :  { %232 = vst.msk [vmem:[%s473_s1 + $0x3] sm:$0x7] %vm229_vm0, %v125_v35  ;;  %233 = vst.msk [vmem:[%s473_s1 + $0x21] sm:$0x7] %vm229_vm0, %v228_v36  ;;  %v234_v37 = vmul.f32 %v228_v36, %v125_v35  ;;  %v236_v3 = vmul.f32 %v228_v36, %v228_v36  ;;  %v237_v38 = vmul.f32 %v125_v35, %v125_v35 }
  0x65   :  { %v235_v39 = vadd.f32 %v234_v37, %v234_v37  ;;  %v238_v40 = vsub.f32 %v236_v3, %v237_v38 }
  0x67   :  { %239 = vst.msk [vmem:[%s473_s1 + $0x6] sm:$0x7] %vm229_vm0, %v235_v39  ;;  %240 = vst.msk [vmem:[%s473_s1 + $0x24] sm:$0x7] %vm229_vm0, %v238_v40  ;;  %v241_v41 = vmul.f32 %v235_v39, %v228_v36  ;;  %v242_v42 = vmul.f32 %v238_v40, %v125_v35  ;;  %v244_v43 = vmul.f32 %v238_v40, %v228_v36 }
  0x68   :  { %v245_v44 = vmul.f32 %v235_v39, %v125_v35 }
  0x69   :  { %v243_v45 = vadd.f32 %v242_v42, %v241_v41 }
  0x6a   :  { %v246_v46 = vsub.f32 %v244_v43, %v245_v44 }
  0x6b   :  { %247 = vst.msk [vmem:[%s473_s1 + $0x9] sm:$0x7] %vm229_vm0, %v243_v45  ;;  %v249_v47 = vmul.f32 %v243_v45, %v228_v36  ;;  %v253_v50 = vmul.f32 %v243_v45, %v125_v35 }
  0x6c   :  { %248 = vst.msk [vmem:[%s473_s1 + $0x27] sm:$0x7] %vm229_vm0, %v246_v46  ;;  %v250_v48 = vmul.f32 %v246_v46, %v125_v35  ;;  %v252_v49 = vmul.f32 %v246_v46, %v228_v36 }
  0x6e   :  { %v251_v51 = vadd.f32 %v250_v48, %v249_v47  ;;  %v254_v52 = vsub.f32 %v252_v49, %v253_v50 }
  0x70   :  { %255 = vst.msk [vmem:[%s473_s1 + $0xc] sm:$0x7] %vm229_vm0, %v251_v51  ;;  %256 = vst.msk [vmem:[%s473_s1 + $0x2a] sm:$0x7] %vm229_vm0, %v254_v52  ;;  %v257_v53 = vmul.f32 %v251_v51, %v228_v36  ;;  %v258_v54 = vmul.f32 %v254_v52, %v125_v35  ;;  %v260_v55 = vmul.f32 %v254_v52, %v228_v36 }
  0x71   :  { %v261_v56 = vmul.f32 %v251_v51, %v125_v35 }
  0x72   :  { %v259_v57 = vadd.f32 %v258_v54, %v257_v53 }
  0x73   :  { %v262_v58 = vsub.f32 %v260_v55, %v261_v56 }
  0x74   :  { %263 = vst.msk [vmem:[%s473_s1 + $0xf] sm:$0x7] %vm229_vm0, %v259_v57  ;;  %v265_v59 = vmul.f32 %v259_v57, %v228_v36  ;;  %v269_v62 = vmul.f32 %v259_v57, %v125_v35 }
  0x75   :  { %264 = vst.msk [vmem:[%s473_s1 + $0x2d] sm:$0x7] %vm229_vm0, %v262_v58  ;;  %v266_v60 = vmul.f32 %v262_v58, %v125_v35  ;;  %v268_v61 = vmul.f32 %v262_v58, %v228_v36 }
  0x77   :  { %v267_v63 = vadd.f32 %v266_v60, %v265_v59  ;;  %v270_v0 = vsub.f32 %v268_v61, %v269_v62 }
  0x79   :  { %271 = vst.msk [vmem:[%s473_s1 + $0x12] sm:$0x7] %vm229_vm0, %v267_v63  ;;  %272 = vst.msk [vmem:[%s473_s1 + $0x30] sm:$0x7] %vm229_vm0, %v270_v0  ;;  %v273_v1 = vmul.f32 %v267_v63, %v228_v36  ;;  %v274_v2 = vmul.f32 %v270_v0, %v125_v35  ;;  %v276_v4 = vmul.f32 %v270_v0, %v228_v36 }
  0x7a   :  { %v277_v5 = vmul.f32 %v267_v63, %v125_v35 }
  0x7b   :  { %v275_v7 = vadd.f32 %v274_v2, %v273_v1 }
  0x7c   :  { %v278_v8 = vsub.f32 %v276_v4, %v277_v5 }
  0x7d   :  { %279 = vst.msk [vmem:[%s473_s1 + $0x15] sm:$0x7] %vm229_vm0, %v275_v7  ;;  %v281_v9 = vmul.f32 %v275_v7, %v228_v36  ;;  %v285_v12 = vmul.f32 %v275_v7, %v125_v35 }
  0x7e   :  { %280 = vst.msk [vmem:[%s473_s1 + $0x33] sm:$0x7] %vm229_vm0, %v278_v8  ;;  %v282_v10 = vmul.f32 %v278_v8, %v125_v35  ;;  %v284_v11 = vmul.f32 %v278_v8, %v228_v36 }
  0x80   :  { %v283_v13 = vadd.f32 %v282_v10, %v281_v9  ;;  %v286_v14 = vsub.f32 %v284_v11, %v285_v12 }
  0x82   :  { %287 = vst.msk [vmem:[%s473_s1 + $0x18] sm:$0x7] %vm229_vm0, %v283_v13  ;;  %288 = vst.msk [vmem:[%s473_s1 + $0x36] sm:$0x7] %vm229_vm0, %v286_v14  ;;  %v289_v15 = vmul.f32 %v283_v13, %v228_v36  ;;  %v290_v16 = vmul.f32 %v286_v14, %v125_v35  ;;  %v292_v17 = vmul.f32 %v286_v14, %v228_v36 }
  0x83   :  { %v293_v18 = vmul.f32 %v283_v13, %v125_v35 }
  0x84   :  { %v291_v19 = vadd.f32 %v290_v16, %v289_v15 }
  0x85   :  { %v294_v20 = vsub.f32 %v292_v17, %v293_v18 }
  0x86   :  { %295 = vst.msk [vmem:[%s473_s1 + $0x1b] sm:$0x7] %vm229_vm0, %v291_v19 }
  0x87   :  { %296 = vst.msk [vmem:[%s473_s1 + $0x39] sm:$0x7] %vm229_vm0, %v294_v20 }
  0x88   :  { %301 = vsyncpa [#allocation3], 1 }

</bundles_post_ra>
